<compile_context>
chip_gen: v7x
topology: tpu7x:2x2x1
jax: 0.10.0
libtpu: 0.0.40
codegen_flags: <defaults>
</compile_context>

<pallas_src>
import jax
import jax.numpy as jnp
from jax.experimental import pallas as pl
from jax.experimental.pallas import tpu as pltpu


def _make_dwconv1d_kernel(K, pad, T, T_out):
    """Builds the kernel body closed over static conv geometry."""

    def kernel(x_ref, w_ref, b_ref, o_ref, xpad_ref):
        # x_ref:    (R_TILE, T)          unpadded input rows (one row = one (b, c))
        # w_ref:    (R_TILE, K)          per-row depthwise filter taps
        # b_ref:    (R_TILE, 1)          per-row bias
        # o_ref:    (R_TILE, T_out)      output rows
        # xpad_ref: (R_TILE, T + 2*pad)  f32 scratch: zero-padded input slab
        r_tile = o_ref.shape[0]

        # Build the zero-padded slab in VMEM (in-kernel halo handling — no
        # extra HBM pass).  Edge zeroing is tiny (pad lanes each side) and is
        # done every step so it is megacore-safe.
        if pad > 0:
            edge = jnp.zeros((r_tile, pad), jnp.float32)
            xpad_ref[:, 0:pad] = edge
            xpad_ref[:, pad + T:pad + T + pad] = edge
        xpad_ref[:, pad:pad + T] = x_ref[...].astype(jnp.float32)

        # Hoist per-row weight columns and bias out of the tap loop.
        b_col = b_ref[...].astype(jnp.float32)                       # (R_TILE, 1)
        w_cols = [w_ref[:, k:k + 1].astype(jnp.float32) for k in range(K)]

        # Tap 0 fused with the bias init; remaining taps accumulate.
        acc = w_cols[0] * xpad_ref[:, 0:T_out] + b_col
        for k in range(1, K):
            acc = acc + w_cols[k] * xpad_ref[:, k:k + T_out]

        o_ref[...] = acc.astype(o_ref.dtype)

    return kernel


def depthwise_conv1d(x, weight, bias, padding):
    """Depthwise 1D convolution matching nn.Conv1d(C, C, K, groups=C, padding=p).

    x:      (B, C, T)
    weight: (C, 1, K)   (PyTorch Conv1d weight layout for groups=C, multiplier 1)
    bias:   (C,)
    returns (B, C, T_out) with T_out = T + 2*padding - K + 1
    """
    B, C, T = x.shape
    K = weight.shape[-1]
    T_out = T + 2 * padding - K + 1
    R = B * C

    # Fold batch into the sublane/channel dim (free reshape of contiguous dims).
    x2 = x.reshape(R, T)
    # Per-row params: channel c = row % C.  Tiny (R*K elements), negligible HBM.
    w_rows = jnp.tile(weight.reshape(C, K), (B, 1))   # (R, K)
    b_rows = jnp.tile(bias.reshape(C, 1), (B, 1))     # (R, 1)

    # Row tile: largest of {32,16,8} sublanes that divides R; otherwise the
    # full row dim (allowed because block dim == full array dim).
    r_tile = R
    for cand in (32, 16, 8):
        if R % cand == 0:
            r_tile = cand
            break

    kernel = _make_dwconv1d_kernel(K, padding, T, T_out)

    out2 = pl.pallas_call(
        kernel,
        out_shape=jax.ShapeDtypeStruct((R, T_out), x.dtype),
        grid_spec=pltpu.PrefetchScalarGridSpec(
            num_scalar_prefetch=0,
            grid=(R // r_tile,),
            in_specs=[
                pl.BlockSpec((r_tile, T), lambda i: (i, 0)),
                pl.BlockSpec((r_tile, K), lambda i: (i, 0)),
                pl.BlockSpec((r_tile, 1), lambda i: (i, 0)),
            ],
            out_specs=pl.BlockSpec((r_tile, T_out), lambda i: (i, 0)),
            scratch_shapes=[
                pltpu.VMEM((r_tile, T + 2 * padding), jnp.float32),
            ],
        ),
        compiler_params=pltpu.CompilerParams(
            dimension_semantics=("parallel",),
            vmem_limit_bytes=32 * 1024 * 1024,
        ),
    )(x2, w_rows, b_rows)

    return out2.reshape(B, C, T_out)


def _reference_dwconv1d(x, weight, bias, padding):
    # Pure-JAX reference (grouped conv via lax.conv_general_dilated).
    C = x.shape[1]
    return jax.lax.conv_general_dilated(
        x, weight,
        window_strides=(1,),
        padding=[(padding, padding)],
        dimension_numbers=("NCH", "OIH", "NCH"),
        feature_group_count=C,
    ) + bias.reshape(1, C, 1)


if __name__ == "__main__":
    # Module config (small, consistent with DepthwiseConv1d usage in Conformer):
    B, C, T = 2, 4, 16
    kernel_size, padding = 3, 1  # "same" output length

    key = jax.random.PRNGKey(0)
    kx, kw, kb = jax.random.split(key, 3)

    x = jax.random.normal(kx, (B, C, T), dtype=jnp.float32)

    # Deterministic init mimicking PyTorch Conv1d defaults:
    # bound = 1/sqrt(fan_in), fan_in = (C/groups)*K = K
    bound = 1.0 / jnp.sqrt(jnp.float32(kernel_size))
    weight = jax.random.uniform(kw, (C, 1, kernel_size), jnp.float32,
                                minval=-bound, maxval=bound)
    bias = jax.random.uniform(kb, (C,), jnp.float32,
                              minval=-bound, maxval=bound)

    out = depthwise_conv1d(x, weight, bias, padding)
    out = jax.block_until_ready(out)

    ref = _reference_dwconv1d(x, weight, bias, padding)
    assert out.shape == (B, C, T + 2 * padding - kernel_size + 1)
    assert jnp.allclose(out, ref, atol=1e-5, rtol=1e-5), "mismatch vs reference"

    print("KERNEL_OK")
</pallas_src>

<mosaic_0001>
module attributes {stable_mosaic.version = 11 : i64} {
  func.func @kernel(%arg0: i32, %arg1: memref<8x16xf32, #tpu.memory_space<vmem>>, %arg2: memref<8x3xf32, #tpu.memory_space<vmem>>, %arg3: memref<8x1xf32, #tpu.memory_space<vmem>>, %arg4: memref<8x16xf32, #tpu.memory_space<vmem>>, %arg5: memref<8x18xf32, #tpu.memory_space<vmem>>) attributes {dimension_semantics = [#tpu.dimension_semantics<parallel>], iteration_bounds = array<i64: 1>, scalar_prefetch = 0 : i64, scratch_operands = 1 : i64, tpu.core_type = #tpu.core_type<tc>, window_params = [{transform_indices = @transform_0, window_bounds = array<i64: 8, 16>}, {transform_indices = @transform_1, window_bounds = array<i64: 8, 3>}, {transform_indices = @transform_2, window_bounds = array<i64: 8, 1>}, {transform_indices = @transform_3, window_bounds = array<i64: 8, 16>}]} {
    %cst = arith.constant 0.000000e+00 : f32
    %0 = vector.broadcast %cst : f32 to vector<8x1xf32>
    %c0 = arith.constant 0 : index
    %c0_0 = arith.constant 0 : index
    %1 = vector.load %arg5[%c0, %c0_0] : memref<8x18xf32, #tpu.memory_space<vmem>>, vector<8x1xf32>
    tpu.vector_store %arg5[%c0, %c0_0], %0 {strides = array<i32>} : memref<8x18xf32, #tpu.memory_space<vmem>>, vector<8x1xf32>,
    %c0_1 = arith.constant 0 : index
    %c17 = arith.constant 17 : index
    %2 = vector.load %arg5[%c0_1, %c17] : memref<8x18xf32, #tpu.memory_space<vmem>>, vector<8x1xf32>
    tpu.vector_store %arg5[%c0_1, %c17], %0 {strides = array<i32>} : memref<8x18xf32, #tpu.memory_space<vmem>>, vector<8x1xf32>,
    %c0_2 = arith.constant 0 : index
    %c0_3 = arith.constant 0 : index
    %3 = vector.load %arg1[%c0_2, %c0_3] : memref<8x16xf32, #tpu.memory_space<vmem>>, vector<8x16xf32>
    %c0_4 = arith.constant 0 : index
    %c1 = arith.constant 1 : index
    %4 = vector.load %arg5[%c0_4, %c1] : memref<8x18xf32, #tpu.memory_space<vmem>>, vector<8x16xf32>
    tpu.vector_store %arg5[%c0_4, %c1], %3 {strides = array<i32>} : memref<8x18xf32, #tpu.memory_space<vmem>>, vector<8x16xf32>,
    %c0_5 = arith.constant 0 : index
    %c0_6 = arith.constant 0 : index
    %5 = vector.load %arg3[%c0_5, %c0_6] : memref<8x1xf32, #tpu.memory_space<vmem>>, vector<8x1xf32>
    %c0_7 = arith.constant 0 : index
    %c0_8 = arith.constant 0 : index
    %6 = vector.load %arg2[%c0_7, %c0_8] : memref<8x3xf32, #tpu.memory_space<vmem>>, vector<8x1xf32>
    %c0_9 = arith.constant 0 : index
    %c1_10 = arith.constant 1 : index
    %7 = vector.load %arg2[%c0_9, %c1_10] : memref<8x3xf32, #tpu.memory_space<vmem>>, vector<8x1xf32>
    %c0_11 = arith.constant 0 : index
    %c2 = arith.constant 2 : index
    %8 = vector.load %arg2[%c0_11, %c2] : memref<8x3xf32, #tpu.memory_space<vmem>>, vector<8x1xf32>
    %c0_12 = arith.constant 0 : index
    %c0_13 = arith.constant 0 : index
    %9 = vector.load %arg5[%c0_12, %c0_13] : memref<8x18xf32, #tpu.memory_space<vmem>>, vector<8x16xf32>
    %10 = vector.broadcast %6 : vector<8x1xf32> to vector<8x16xf32>
    %11 = arith.mulf %10, %9 : vector<8x16xf32>
    %12 = vector.broadcast %5 : vector<8x1xf32> to vector<8x16xf32>
    %13 = arith.addf %11, %12 : vector<8x16xf32>
    %c0_14 = arith.constant 0 : index
    %c1_15 = arith.constant 1 : index
    %14 = vector.load %arg5[%c0_14, %c1_15] : memref<8x18xf32, #tpu.memory_space<vmem>>, vector<8x16xf32>
    %15 = vector.broadcast %7 : vector<8x1xf32> to vector<8x16xf32>
    %16 = arith.mulf %15, %14 : vector<8x16xf32>
    %17 = arith.addf %13, %16 : vector<8x16xf32>
    %c0_16 = arith.constant 0 : index
    %c2_17 = arith.constant 2 : index
    %18 = vector.load %arg5[%c0_16, %c2_17] : memref<8x18xf32, #tpu.memory_space<vmem>>, vector<8x16xf32>
    %19 = vector.broadcast %8 : vector<8x1xf32> to vector<8x16xf32>
    %20 = arith.mulf %19, %18 : vector<8x16xf32>
    %21 = arith.addf %17, %20 : vector<8x16xf32>
    %c0_18 = arith.constant 0 : index
    %c0_19 = arith.constant 0 : index
    %22 = vector.load %arg4[%c0_18, %c0_19] : memref<8x16xf32, #tpu.memory_space<vmem>>, vector<8x16xf32>
    tpu.vector_store %arg4[%c0_18, %c0_19], %21 {strides = array<i32>} : memref<8x16xf32, #tpu.memory_space<vmem>>, vector<8x16xf32>,
    return
  }
  func.func @transform_0(%arg0: i32) -> (i32, i32) {
    %c0_i32 = arith.constant 0 : i32
    %c0_i32_0 = arith.constant 0 : i32
    return %arg0, %c0_i32 : i32, i32
  }
  func.func @transform_1(%arg0: i32) -> (i32, i32) {
    %c0_i32 = arith.constant 0 : i32
    %c0_i32_0 = arith.constant 0 : i32
    return %arg0, %c0_i32 : i32, i32
  }
  func.func @transform_2(%arg0: i32) -> (i32, i32) {
    %c0_i32 = arith.constant 0 : i32
    %c0_i32_0 = arith.constant 0 : i32
    return %arg0, %c0_i32 : i32, i32
  }
  func.func @transform_3(%arg0: i32) -> (i32, i32) {
    %c0_i32 = arith.constant 0 : i32
    %c0_i32_0 = arith.constant 0 : i32
    return %arg0, %c0_i32 : i32, i32
  }
}

</mosaic_0001>

<bundles_post_ra>
// kernel: tpu_custom_call.1
= control target key start
LH: loop header
LB: loop body
LE: loop exit
PB: predicated region body
PF: predicated region fallthrough
CT: control target
= control target key end

     0   :  { %v113_v2 = vmov 2   ;;  %s114_s16 = smov 1   ;;  %vm15_vm0 = vcmask 7168   ;;  %vm17_vm1 = vcmask 146568   ;;  %v115_v3 = vmov 1   ;;  %s162_s0 = inlined_call_operand.vmem [shape: f32[8,16], index: 0, kind: input, shape index: {}]   ;;  %s163_s1 = inlined_call_operand.vmem [shape: f32[8,3], index: 1, kind: input, shape index: {}]   ;;  %s164_s2 = inlined_call_operand.vmem [shape: f32[8,1], index: 2, kind: input, shape index: {}]   ;;  %s165_s3 = inlined_call_operand.hbm [shape: f32[8,16], index: 3, kind: output, shape index: {}]  }
   0x1   :  { %v19_v0 = vld [vmem:[%s162_s0] sm:$0xff]  ;;  %86 = vset.pattern.permute.xlu1 %v113_v2  ;;  %85 = vset.pattern.permute.xlu0 %v115_v3  ;;  %v116_v4 = vmov 0.0  }
   0x2   :  { %v27_v1 = vld [vmem:[%s163_s1] sm:$0xff]  ;;  %21 = vrot.lane.b32.xlu0 %v19_v0, %s114_s16  ;;  %16 = vst.msk [vmem:[#allocation2] sm:$0xff] %vm15_vm0, %v116_v4 }
   0x3   :  { %52 = vperm.xlu1 %86, %v27_v1  }
   0x4   :  { %8 = vsyncpa [#allocation4], 0  ;;  %18 = vst.msk [vmem:[#allocation2] sm:$0xff] %vm17_vm1, %v116_v4  ;;  %v117_v5 = vmov 0   ;;  %v26_v6 = vld [vmem:[%s164_s2] sm:$0xff]  ;;  %vm24_vm2 = vcmask 138248  }
   0x5   :  { %s118_s1 = smov 126   ;;  %s119_s18 = smov 127   ;;  %vm61_vm3 = vcmask 130048  }
   0x6   :  { %42 = vperm.xlu0 %85, %v27_v1   ;;  %s120_s2 = smov [#allocation3]  }
   0x7   :  { %87 = vset.pattern.permute.xlu1 %v117_v5  ;;  %s69_s19 = sshll.u32 %s120_s2, 4  ;;  %s70_s19 = int_to_ptr.vmem [resolvable:$true] %s69_s19 }
   0x8   :  { %31 = vperm.xlu1 %87, %v27_v1   ;;  %s89_s20 = scalar_lea.vmem %s70_s19, 128  ;;  %p94_p1 = scmp.lt.s32.totalorder %s70_s19, %s70_s19 }
   0x9   :  { %p90_p0 = scmp.ne.s32.totalorder %s70_s19, %s89_s20  ;;  %p95_p2 = scmp.lt.s32.totalorder %s89_s20, %s89_s20 }
   0xa   :  { %88 = vset.pattern.permute.xlu0 %v113_v2 }
   0xb   :  { %p96_p3 = por %p95_p2, %p94_p1 }
   0xc   :  { %37 = vperm.xlu1 %87, %v26_v6  }
   0xd   :  { %p97_p4 = pnand %p96_p3, %p90_p0 }
  0x74   :  { %v22_v7 = vpop.permute.xlu0 %21 }
  0x75   :  { %25 = vst.msk [vmem:[#allocation2] sm:$0xff] %vm24_vm2, %v22_v7 }
  0x7c   :  { %v28_v9 = vld [vmem:[#allocation2] sm:$0xff] }
  0x82   :  { %v53_v8 = vpop.permute.xlu1 %52 }
  0x83   :  { %v55_v10 = vmul.f32 %v53_v8, %v28_v9 }
  0x85   :  { %v43_v11 = vpop.permute.xlu0 %42  ;;  %57 = vrot.lane.b32.xlu1 %v55_v10, %s118_s1 }
  0x86   :  { %v45_v12 = vmul.f32 %v43_v11, %v28_v9 }
  0x87   :  { %v32_v13 = vpop.permute.xlu1 %31 }
  0x88   :  { %47 = vrot.lane.b32.xlu0 %v45_v12, %s119_s18  ;;  %v34_v15 = vmul.f32 %v32_v13, %v28_v9 }
  0x8b   :  { %v38_v14 = vpop.permute.xlu1 %37 }
  0x8c   :  { %v40_v16 = vadd.f32 %v38_v14, %v34_v15 }
  0xf7   :  { %v58_v19 = vpop.permute.xlu1 %57 }
  0xfa   :  { %v48_v17 = vpop.permute.xlu0 %47 }
  0xfb   :  { %v50_v18 = vadd.f32 %v48_v17, %v40_v16 }
  0xfd   :  { %v60_v20 = vadd.f32 %v58_v19, %v50_v18 }
  0xff   :  { %62 = vst.msk [vmem:[#allocation3] sm:$0xff] %vm61_vm3, %v60_v20 }
 0x100   :  { %100 = shalt.err (!%p97_p4)
}
 0x101   :  { %s101_s23 = scalar_lea.hbm %s165_s3, 128 }
 0x102   :  { %p102_p5 = scmp.ne.s32.totalorder %s165_s3, %s101_s23  ;;  %p105_p6 = scmp.lt.u32.totalorder %s101_s23, %s165_s3 }
 0x104   :  { %p107_p7 = pnand %p105_p6, %p102_p5 }
 0x106   :  { %110 = shalt.err (!%p107_p7)
}
 0x107   :  { %72 = dma.vmem_to_hbm [thread:$0]  %s70_s19, 128, %s165_s3, [#allocation4]  }
 0x108   :  { %111 = dma.done.wait [#allocation4], 128  }
 0x109   :  { %112 = vsyncadd [#allocation4], 4294967168 }
 0x10a   :  { %76 = vsyncpa [#allocation4], 1 }

</bundles_post_ra>
